<compile_context>
chip_gen: v6e
topology: v6e:2x2x1
jax: 0.10.0
libtpu: 0.0.40
codegen_flags: <defaults>
</compile_context>

<pallas_src>
import jax
import jax.numpy as jnp
from jax.experimental import pallas as pl
from jax.experimental.pallas import tpu as pltpu


def _cdiv(a: int, b: int) -> int:
    return (a + b - 1) // b


def _tpu_vmem_bytes() -> int:
    """Per-core VMEM capacity; conservative 64 MiB (v7x) if unavailable."""
    try:
        info = pltpu.get_tpu_info()
    except Exception:  # narrow: hardware query only, never hides kernel errors
        return 64 << 20
    for attr in ("vmem_capacity_bytes", "vmem_size_bytes", "vmem_bytes"):
        val = getattr(info, attr, None)
        if val:
            return int(val)
    return 64 << 20


def _pick_group(K: int, bins: int, tT: int, itemsize: int) -> int:
    # Fold G codebooks into each MXU contraction; cap the stacked one-hot at
    # 8 MiB so it stays a cheap VMEM intermediate on every generation.
    for G in (4, 2, 1):
        if K % G == 0 and G * bins * tT * itemsize <= (8 << 20):
            return G
    return 1


def _vmem_estimate(K, bins, D, G, tT, itemsize) -> int:
    w_bytes = K * bins * D * itemsize          # grouped, pre-transposed codebooks
    return (2 * w_bytes                        # weights (default double-buffered)
            + 2 * K * tT * 4                   # codes blocks (x2 pipeline)
            + 2 * D * tT * 4                   # output blocks (f32, x2 pipeline)
            + bins * tT * 4                    # hoisted iota (int32)
            + G * bins * tT * itemsize         # stacked one-hot
            + D * tT * 4)                      # dot-result staging


def _choose_tiling(T, B, K, bins, D, itemsize, vmem_cap):
    big_vmem = vmem_cap >= (96 << 20)          # v5e / v6e: 128 MiB per core
    cands = (1024, 512, 256, 128) if big_vmem else (512, 256, 128)
    min_steps = 2 if big_vmem else 4           # v7x: 2 TCs -> want >= 2 steps/TC
    budget = int(0.6 * vmem_cap)
    for tT in cands:
        n_t = _cdiv(T, tT)
        pad = n_t * tT - T
        if tT > 128:
            if pad > 0 and pad / float(n_t * tT) > 0.25:   # >25% padded work
                continue
            if B * n_t < min_steps:                        # grid too shallow
                continue
        G = _pick_group(K, bins, tT, itemsize)
        if _vmem_estimate(K, bins, D, G, tT, itemsize) <= budget:
            return tT, G
    tT = 128
    return tT, _pick_group(K, bins, tT, itemsize)


def _make_kernel(K, G, bins, D, tT, compute_dtype):
    num_groups = K // G

    def kernel(codes_ref, w_ref, out_ref):
        # codes_ref: (K, 1, tT) int32          codes for one (batch, T-tile) block
        # w_ref:     (num_groups, D, G*bins)   grouped, pre-transposed codebooks
        # out_ref:   (D, tT) f32               lane-dense output block (T on lanes)

        # Hoisted once per grid step (JAX does not CSE iota/broadcast).
        iota = jax.lax.broadcasted_iota(jnp.int32, (bins, tT), 0)

        def group_onehot(g):
            # Stack G per-codebook one-hots along the contraction dim:
            # row j*bins + c  <->  column j*bins + c of w_ref[g].
            parts = [(iota == codes_ref[g * G + j]).astype(compute_dtype)
                     for j in range(G)]
            return parts[0] if G == 1 else jnp.concatenate(parts, axis=0)

        def group_dot(g):
            return jnp.dot(w_ref[g], group_onehot(g),
                           preferred_element_type=jnp.float32)

        # Peel group 0: direct store -> no zero-init, no read-modify-write pass.
        out_ref[...] = group_dot(0)

        if num_groups > 1:
            def body(g, carry):
                out_ref[...] += group_dot(g)
                return carry
            jax.lax.fori_loop(1, num_groups, body, 0, unroll=True)

    return kernel


def encodec_features_pallas(codes: jax.Array, codebook_weights: jax.Array,
                            bins: int, *, compute_dtype=jnp.bfloat16) -> jax.Array:
    """codes: (B, K, T) int, codebook_weights: (K*bins, D) f32 -> (B, D, T) f32.

    compute_dtype=jnp.float32 gives exact parity with the f32 gather at ~3x MXU
    cost; the bf16 default only rounds codebook entries (one-hot is exact,
    accumulation stays f32 on the MXU).
    """
    B, K, T = codes.shape
    KB, D = codebook_weights.shape
    assert KB == K * bins, (KB, K, bins)

    itemsize = jnp.dtype(compute_dtype).itemsize
    vmem_cap = _tpu_vmem_bytes()
    tT, G = _choose_tiling(T, B, K, bins, D, itemsize, vmem_cap)
    num_groups = K // G
    n_t = _cdiv(T, tT)
    T_pad = n_t * tT

    codes_i = codes.astype(jnp.int32)
    if T_pad != T:
        # Sentinel -1 matches no one-hot row -> padded frames are all-zero and
        # are sliced off below (keeps every output tile lane-aligned).
        codes_i = jnp.pad(codes_i, ((0, 0), (0, 0), (0, T_pad - T)),
                          constant_values=-1)
    # Singleton axis keeps K off the tiled (second-minor, minor) dims so the
    # in-kernel dynamic codes_ref[k] indexing is a plain leading-axis slice.
    codes4 = codes_i.reshape(B, K, 1, T_pad)

    # One-time plain-JAX prep: (K*bins, D) -> (K//G, D, G*bins). G codebooks are
    # grouped along the contraction dim and transposed so the kernel dot emits
    # (D, tT) directly; cast to compute_dtype for full-rate MXU.
    w_t = jnp.transpose(
        codebook_weights.reshape(num_groups, G * bins, D).astype(compute_dtype),
        (0, 2, 1))

    est = _vmem_estimate(K, bins, D, G, tT, itemsize)
    vmem_limit = int(min(max(2 * est + (2 << 20), 32 << 20),
                         int(0.8 * vmem_cap)))

    cost = pl.CostEstimate(
        flops=int(2 * B * T_pad * D * K * bins),
        transcendentals=0,
        bytes_accessed=int(codes4.size * 4 + w_t.size * itemsize
                           + B * D * T_pad * 4))

    out = pl.pallas_call(
        _make_kernel(K, G, bins, D, tT, compute_dtype),
        out_shape=jax.ShapeDtypeStruct((B, D, T_pad), jnp.float32),
        grid=(B, n_t),
        in_specs=[
            pl.BlockSpec((None, K, 1, tT), lambda b, t: (b, 0, 0, t)),
            # Constant block index: the grouped codebooks are DMA'd once and
            # stay VMEM-resident across the whole grid.
            pl.BlockSpec((num_groups, D, G * bins), lambda b, t: (0, 0, 0)),
        ],
        out_specs=pl.BlockSpec((None, D, tT), lambda b, t: (b, 0, t)),
        compiler_params=pltpu.CompilerParams(
            dimension_semantics=("parallel", "parallel"),
            vmem_limit_bytes=vmem_limit),
        cost_estimate=cost,
    )(codes4, w_t)

    if T_pad != T:
        out = out[:, :, :T]
    return out


def encodec_features_reference(codes: jax.Array, codebook_weights: jax.Array,
                               bins: int) -> jax.Array:
    """Plain-JAX mirror of the PyTorch forward (codes laid out (B, K, T))."""
    K = codes.shape[1]
    offsets = jnp.arange(K, dtype=codes.dtype) * bins
    idxs = codes + offsets[None, :, None]            # (B, K, T)
    emb = codebook_weights[idxs]                     # (B, K, T, D)
    return jnp.transpose(emb.sum(axis=1), (0, 2, 1))  # (B, D, T)


if __name__ == "__main__":
    # Small deterministic config (real encodec_24khz: bins=1024, D=128, K=16).
    B, K, T = 2, 4, 128       # batch, num codebooks, frames
    bins, D = 64, 32          # codebook size, codebook dim

    key = jax.random.PRNGKey(0)
    k_codes, k_w = jax.random.split(key)
    codebook_weights = jax.random.normal(k_w, (K * bins, D), dtype=jnp.float32)
    codes = jax.random.randint(k_codes, (B, K, T), 0, bins, dtype=jnp.int32)

    out = jax.block_until_ready(
        encodec_features_pallas(codes, codebook_weights, bins))
    assert out.shape == (B, D, T)

    # Kernel rounds codebooks to bf16 (one-hot exact, f32 MXU accumulation):
    # tight check against bf16-rounded weights ...
    ref_bf16 = encodec_features_reference(
        codes, codebook_weights.astype(jnp.bfloat16).astype(jnp.float32), bins)
    assert jnp.allclose(out, ref_bf16, atol=1e-5, rtol=1e-5), "bf16 mismatch"
    # ... and a sanity check against the f32 reference within bf16 rounding.
    ref_f32 = encodec_features_reference(codes, codebook_weights, bins)
    assert jnp.allclose(out, ref_f32, atol=1e-1, rtol=1e-2), "f32 sanity mismatch"

    # Exercise the ragged-T padding path (T not a multiple of the tile).
    T2 = 96
    codes2 = jax.random.randint(k_codes, (B, K, T2), 0, bins, dtype=jnp.int32)
    out2 = jax.block_until_ready(
        encodec_features_pallas(codes2, codebook_weights, bins))
    ref2 = encodec_features_reference(
        codes2, codebook_weights.astype(jnp.bfloat16).astype(jnp.float32), bins)
    assert out2.shape == (B, D, T2)
    assert jnp.allclose(out2, ref2, atol=1e-5, rtol=1e-5), "padded-T mismatch"

    # Exercise the multi-group (fori_loop) accumulation path: K=8 -> G=4, 2 groups.
    K3 = 8
    k_c3, k_w3 = jax.random.split(jax.random.PRNGKey(0), 2)
    w3 = jax.random.normal(k_w3, (K3 * bins, D), dtype=jnp.float32)
    codes3 = jax.random.randint(k_c3, (B, K3, T), 0, bins, dtype=jnp.int32)
    out3 = jax.block_until_ready(encodec_features_pallas(codes3, w3, bins))
    ref3 = encodec_features_reference(
        codes3, w3.astype(jnp.bfloat16).astype(jnp.float32), bins)
    assert jnp.allclose(out3, ref3, atol=1e-4, rtol=1e-4), "multi-group mismatch"

    print("KERNEL_OK")
</pallas_src>

<mosaic_0001>
module attributes {stable_mosaic.version = 11 : i64} {
  func.func @kernel(%arg0: i32, %arg1: i32, %arg2: memref<1x4x1x128xi32, #tpu.memory_space<vmem>>, %arg3: memref<1x32x256xbf16, #tpu.memory_space<vmem>>, %arg4: memref<1x32x128xf32, #tpu.memory_space<vmem>>) attributes {dimension_semantics = [#tpu.dimension_semantics<parallel>, #tpu.dimension_semantics<parallel>], iteration_bounds = array<i64: 2, 1>, scalar_prefetch = 0 : i64, scratch_operands = 0 : i64, tpu.core_type = #tpu.core_type<tc>, window_params = [{transform_indices = @transform_0, window_bounds = array<i64: 1, 4, 1, 128>}, {pipeline_mode = #tpu.pipeline_mode<synchronous>, transform_indices = @transform_1, window_bounds = array<i64: 1, 32, 256>}, {transform_indices = @transform_2, window_bounds = array<i64: 1, 32, 128>}]} {
    %0 = tpu.iota {dimensions = array<i32: 0>} : vector<64x128xi32>
    %c0 = arith.constant 0 : index
    %c0_0 = arith.constant 0 : index
    %c0_1 = arith.constant 0 : index
    %1 = vector.load %arg3[%c0, %c0_0, %c0_1] : memref<1x32x256xbf16, #tpu.memory_space<vmem>>, vector<1x32x256xbf16>
    %2 = vector.shape_cast %1 : vector<1x32x256xbf16> to vector<32x256xbf16>
    %c0_2 = arith.constant 0 : index
    %c0_3 = arith.constant 0 : index
    %c0_4 = arith.constant 0 : index
    %c0_5 = arith.constant 0 : index
    %3 = vector.load %arg2[%c0_2, %c0_3, %c0_4, %c0_5] : memref<1x4x1x128xi32, #tpu.memory_space<vmem>>, vector<1x1x1x128xi32>
    %4 = vector.shape_cast %3 : vector<1x1x1x128xi32> to vector<1x128xi32>
    %5 = vector.broadcast %4 : vector<1x128xi32> to vector<64x128xi32>
    %6 = arith.cmpi eq, %0, %5 : vector<64x128xi32>
    %7 = arith.extui %6 : vector<64x128xi1> to vector<64x128xi32>
    %8 = arith.sitofp %7 : vector<64x128xi32> to vector<64x128xf32>
    %9 = arith.truncf %8 : vector<64x128xf32> to vector<64x128xbf16>
    %c0_6 = arith.constant 0 : index
    %c1 = arith.constant 1 : index
    %c0_7 = arith.constant 0 : index
    %c0_8 = arith.constant 0 : index
    %10 = vector.load %arg2[%c0_6, %c1, %c0_7, %c0_8] : memref<1x4x1x128xi32, #tpu.memory_space<vmem>>, vector<1x1x1x128xi32>
    %11 = vector.shape_cast %10 : vector<1x1x1x128xi32> to vector<1x128xi32>
    %12 = vector.broadcast %11 : vector<1x128xi32> to vector<64x128xi32>
    %13 = arith.cmpi eq, %0, %12 : vector<64x128xi32>
    %14 = arith.extui %13 : vector<64x128xi1> to vector<64x128xi32>
    %15 = arith.sitofp %14 : vector<64x128xi32> to vector<64x128xf32>
    %16 = arith.truncf %15 : vector<64x128xf32> to vector<64x128xbf16>
    %c0_9 = arith.constant 0 : index
    %c2 = arith.constant 2 : index
    %c0_10 = arith.constant 0 : index
    %c0_11 = arith.constant 0 : index
    %17 = vector.load %arg2[%c0_9, %c2, %c0_10, %c0_11] : memref<1x4x1x128xi32, #tpu.memory_space<vmem>>, vector<1x1x1x128xi32>
    %18 = vector.shape_cast %17 : vector<1x1x1x128xi32> to vector<1x128xi32>
    %19 = vector.broadcast %18 : vector<1x128xi32> to vector<64x128xi32>
    %20 = arith.cmpi eq, %0, %19 : vector<64x128xi32>
    %21 = arith.extui %20 : vector<64x128xi1> to vector<64x128xi32>
    %22 = arith.sitofp %21 : vector<64x128xi32> to vector<64x128xf32>
    %23 = arith.truncf %22 : vector<64x128xf32> to vector<64x128xbf16>
    %c0_12 = arith.constant 0 : index
    %c3 = arith.constant 3 : index
    %c0_13 = arith.constant 0 : index
    %c0_14 = arith.constant 0 : index
    %24 = vector.load %arg2[%c0_12, %c3, %c0_13, %c0_14] : memref<1x4x1x128xi32, #tpu.memory_space<vmem>>, vector<1x1x1x128xi32>
    %25 = vector.shape_cast %24 : vector<1x1x1x128xi32> to vector<1x128xi32>
    %26 = vector.broadcast %25 : vector<1x128xi32> to vector<64x128xi32>
    %27 = arith.cmpi eq, %0, %26 : vector<64x128xi32>
    %28 = arith.extui %27 : vector<64x128xi1> to vector<64x128xi32>
    %29 = arith.sitofp %28 : vector<64x128xi32> to vector<64x128xf32>
    %30 = arith.truncf %29 : vector<64x128xf32> to vector<64x128xbf16>
    %31 = tpu.concatenate %9, %16, %23, %30 in 0 : vector<64x128xbf16>, vector<64x128xbf16>, vector<64x128xbf16>, vector<64x128xbf16> -> vector<256x128xbf16>
    %cst = arith.constant dense<0.000000e+00> : vector<32x128xf32>
    %32 = tpu.matmul %2, %31, %cst {dimension_numbers = #tpu.dot_dimension_numbers<[1], [0], [0], [1], [0, 0, 1, 1], [], []>} : vector<32x256xbf16>, vector<256x128xbf16>, vector<32x128xf32> -> vector<32x128xf32>
    %c0_15 = arith.constant 0 : index
    %c0_16 = arith.constant 0 : index
    %c0_17 = arith.constant 0 : index
    %33 = vector.load %arg4[%c0_15, %c0_16, %c0_17] : memref<1x32x128xf32, #tpu.memory_space<vmem>>, vector<1x32x128xf32>
    %34 = vector.shape_cast %33 : vector<1x32x128xf32> to vector<32x128xf32>
    %35 = vector.shape_cast %32 : vector<32x128xf32> to vector<1x32x128xf32>
    tpu.vector_store %arg4[%c0_15, %c0_16, %c0_17], %35 {strides = array<i32>} : memref<1x32x128xf32, #tpu.memory_space<vmem>>, vector<1x32x128xf32>,
    return
  }
  func.func @transform_0(%arg0: i32, %arg1: i32) -> (i32, i32, i32, i32) {
    %c0_i32 = arith.constant 0 : i32
    %c0_i32_0 = arith.constant 0 : i32
    %c0_i32_1 = arith.constant 0 : i32
    return %arg0, %c0_i32, %c0_i32_0, %arg1 : i32, i32, i32, i32
  }
  func.func @transform_1(%arg0: i32, %arg1: i32) -> (i32, i32, i32) {
    %c0_i32 = arith.constant 0 : i32
    %c0_i32_0 = arith.constant 0 : i32
    %c0_i32_1 = arith.constant 0 : i32
    %c0_i32_2 = arith.constant 0 : i32
    return %c0_i32, %c0_i32_0, %c0_i32_1 : i32, i32, i32
  }
  func.func @transform_2(%arg0: i32, %arg1: i32) -> (i32, i32, i32) {
    %c0_i32 = arith.constant 0 : i32
    %c0_i32_0 = arith.constant 0 : i32
    return %arg0, %c0_i32, %arg1 : i32, i32, i32
  }
}

</mosaic_0001>

<bundles_post_ra>
// kernel: tpu_custom_call.1
= control target key start
LH: loop header
LB: loop body
LE: loop exit
PB: predicated region body
PF: predicated region fallthrough
CT: control target
= control target key end

     0   :  { %7 = vsyncpa [#allocation3], 0  ;;  %s1194_s0 = inlined_call_operand.hbm [shape: s32[2,4,1,128], index: 0, kind: input, shape index: {}]   ;;  %s1195_s1 = inlined_call_operand.hbm [shape: bf16[1,32,256], index: 1, kind: input, shape index: {}]   ;;  %s1196_s2 = inlined_call_operand.hbm [shape: f32[2,32,128], index: 2, kind: output, shape index: {}]  }
   0x1   :  { %9 = vsyncpa [#allocation3 + $0x1], 0 }
   0x2   :  { %10 = vsyncpa [#allocation6], 0 }
   0x3   :  { %11 = vsyncpa [#allocation4], 0 }
   0x4   :  { %13 = vsyncpa [#allocation4 + $0x1], 0  ;;  %s915_s9 = smov 0   ;;  %s917_s10 = smov 0  }
   0x5   :  { %s919_s11 = smov 0   ;;  %s921_s12 = smov 0  }
   0x6   :  { %s923_s13 = smov 0   ;;  %s925_s14 = smov 0  }
   0x7 LB: > { %s526_s15 = sadd.s32 4294967295, %s888_s14   ;;  %s527_s16 = sadd.s32 4294967294, %s888_s14   ;;  %s888_s14 = sphi %s925_s14, %s19_s14   ;;  %s884_s13 = sphi %s923_s13, %s1214_s13   ;;  %s880_s12 = sphi %s921_s12, %s1213_s12   ;;  %s876_s11 = sphi %s919_s11, %s1212_s11   ;;  %s872_s10 = sphi %s917_s10, %s1211_s10   ;;  %s868_s9 = sphi %s915_s9, %s1210_s9  }
   0x8   : > { %p53_p0 = scmp.ne.s32.totalorder %s872_s10, %s868_s9  ;;  %p949_p1 = scmp.eq.s32.totalorder %s526_s15, 0 }
   0x9   : > { %p953_p2 = scmp.eq.s32.totalorder %s526_s15, 1  ;;  %p106_p3 = scmp.eq.s32.totalorder %s527_s16, 1 }
   0xa   : > { %p959_p4 = por %p949_p1, %p53_p0  ;;  %p528_p5 = scmp.ge.s32.totalorder %s888_s14, 1 }
   0xb   : > { %p964_p6 = por %p106_p3, %p53_p0  ;;  %p113_p7 = scmp.lt.s32.totalorder %s888_s14, 3 }
   0xc   : > { %s1200_s19 = scalar_select %p959_p4, 1, 0 }
   0xd   : > { %s1201_s20 = scalar_select %p964_p6, 1, 0 }
   0xe   : > { %p969_p8 = pnand %p528_p5, %p113_p7  ;;  %s890_s22 = smov [#allocation5]  }
   0xf   : > { %s125_s23 = sshll.u32 %s890_s22, 4  ;;  %s31_s25 = sadd.s32 1, %s884_s13  ;;  %s126_s23 = int_to_ptr.vmem [resolvable:$true] %s125_s23 }
  0x10   : > { %p672_p9 = pneg %p969_p8  ;;  %s761_s26 = scalar_lea.vmem %s126_s23, 512 }
  0x11   : > { %p762_p13 = scmp.ne.s32.totalorder %s126_s23, %s761_s26  ;;  %p769_p5 = scmp.lt.s32.totalorder %s126_s23, %s126_s23 }
  0x12   : > { %p978_p11 = pnand %p672_p9, %p949_p1  ;;  %p770_p7 = scmp.lt.s32.totalorder %s761_s26, %s761_s26 }
  0x14   : > { %p752_p12 = pneg %p978_p11  ;;  %p771_p6 = por %p770_p7, %p769_p5 }
  0x16   : > { %p764_p0 = pnand %p762_p13, %p752_p12 }
  0x18   : > { %p765_p3 = pneg %p764_p0 }
  0x1a   : > { %p772_p4 = pnand %p771_p6, %p765_p3 }
  0x1c   : > { %775 = shalt.err (!%p772_p4)
}
  0x1d   : > { %s891_s27 = smov 128   ;;  %s892_s28 = smov 8  }
  0x1e   : > { %675 = dma.hbm_to_vmem [thread:$0]  (!%p978_p11), %s1195_s1, 512, %s126_s23, [#allocation6], %s891_s27, %s891_s27, %s892_s28  }
  0x1f   : > { %p33_p6 = scmp.ge.s32.totalorder %s31_s25, 2  ;;  %s40_s3 = sadd.s32 1, %s876_s11 }
  0x20   : > { %p47_p4 = scmp.ne.s32.totalorder %s876_s11, %s872_s10  ;;  %p48_p9 = scmp.eq.s32.totalorder %s888_s14, 0 }
  0x21   : > { %s1216_s25 = smov (%p33_p6, %s31_s25), 0  ;;  %p685_p0 = scmp.lt.s32.totalorder %s888_s14, 2 }
  0x22   : > { %p996_p12 = por %p48_p9, %p47_p4  ;;  %p1002_p13 = por %p953_p2, %p47_p4 }
  0x23   : > { %s35_s6 = ssub.s32 %s884_s13, %s1216_s25  ;;  %s139_s7 = sand.u32 1, %s876_s11  }
  0x24   : > { %p38_p11 = scmp.eq.s32.totalorder %s35_s6, 0  ;;  %s531_s8 = sshll.u32 %s139_s7, 2 }
  0x25   : > { %s618_s16 = sshll.u32 %s884_s13, 6  ;;  %s143_s26 = scalar_lea.vmem [#allocation2], %s531_s8 }
  0x26   : > { %s1011_s15 = scalar_select %p38_p11, %s876_s11, %s40_s3  }
  0x27   : > { %s150_s24 = scalar_lea.hbm %s1194_s0, %s618_s16  ;;  %s151_s27 = sshll.u32 %s143_s26, 4  ;;  %s152_s27 = int_to_ptr.vmem [resolvable:$true] %s151_s27 }
  0x28   : > { %p1019_p2 = pnand %p685_p0, %p996_p12  ;;  %s140_s28 = scalar_lea.sflag [#allocation3], %s139_s7 }
  0x29   : > { %s789_s29 = scalar_lea.vmem %s152_s27, 64  ;;  %s893_s30 = smov [#allocation2]  }
  0x2a   : > { %p778_p3 = pneg %p1019_p2  ;;  %p790_p5 = scmp.ne.s32.totalorder %s152_s27, %s789_s29 }
  0x2b   : > { %s794_s3 = sshll.u32 %s893_s30, 4  ;;  %s795_s3 = int_to_ptr.vmem [resolvable:$false] %s794_s3 }
  0x2c   : > { %p792_p7 = pnand %p790_p5, %p778_p3  ;;  %s796_s6 = scalar_lea.vmem %s795_s3, 128 }
  0x2d   : > { %p797_p4 = scmp.lt.s32.totalorder %s152_s27, %s795_s3  ;;  %p798_p9 = scmp.lt.s32.totalorder %s796_s6, %s789_s29 }
  0x2e   : > { %p793_p6 = pneg %p792_p7 }
  0x2f   : > { %p799_p11 = por %p798_p9, %p797_p4 }
  0x31   : > { %p800_p10 = pnand %p799_p11, %p793_p6 }
  0x33   : > { %803 = shalt.err (!%p800_p10)
}
  0x34   : > { %s894_s4 = smov 16   ;;  %s895_s8 = smov 1  }
  0x35   : > { %679 = dma.hbm_to_vmem [thread:$0]  (!%p1019_p2), %s150_s24, 64, %s152_s27, %s140_s28, %s894_s4, %s894_s4, %s895_s8  }
  0x36   : > { %163 = sbr.rel (%p969_p8) target bundleno = 317 (0x13d), region = 28  ;;  %s1030_s7 = sand.u32 (!%p969_p8), 1, %s872_s10  }
  0x37   : > { %s535_s16 = sshll.u32 (!%p969_p8), %s1030_s7, 2  ;;  %s166_s22 = scalar_lea.sflag (!%p969_p8), [#allocation3], %s1030_s7 }
  0x38   : > { %s1034_s23 = scalar_lea.vmem (!%p969_p8), [#allocation2], %s535_s16  ;;  %p1207_p12 = scmp.ne.s32.totalorder (!%p969_p8), %s1200_s19, 0 }
  0x3b   : > { %855 = dma.done.wait (%p1207_p12), %s166_s22, 64  }
  0x3c   : > { %857 = vsyncadd (%p1207_p12), %s166_s22, 4294967232 }
  0x3d   : > { %859 = dma.done.wait (%p949_p1), [#allocation6], 512  }
  0x3e   : > { %861 = vsyncadd (%p949_p1), [#allocation6], 4294966784  ;;  %v195_v0 = vlaneseq  ;;  %v568_v8 = vld [vmem:[%s1034_s23 + $0x3] ss:$0 sm:$0xff]  ;;  %v548_v9 = vld [vmem:[%s1034_s23 + $0x1] ss:$0 sm:$0xff] }
  0x3f   : > { %v746_v10 = vld [vmem:[#allocation5 + $0x4] ss:$8 sps:$4 sm:$0xff]   ;;  %v896_v11 = vmov 1.0|1.0   ;;  %v749_v13 = vld [vmem:[#allocation5 + $0x14] ss:$8 sps:$4 sm:$0xff]  }
  0x40   : > { %v1044_v1 = vshrl.u32 %v195_v0, 7  ;;  %395 = vmatprep.mubr.bf16.mxu0 %v746_v10  ;;  %403 = vmatprep.mubr.bf16.mxu1 %v749_v13  ;;  %v558_v14 = vld [vmem:[%s1034_s23 + $0x2] ss:$0 sm:$0xff]  ;;  %v538_v15 = vld [vmem:[%s1034_s23] ss:$0 sm:$0xff]  ;;  %s537_s17 = sshll.u32 %s1030_s7, 5 }
  0x41   : > { %v744_v16 = vld [vmem:[#allocation5] ss:$8 sps:$4 sm:$0xff]   ;;  %v747_v17 = vld [vmem:[#allocation5 + $0x10] ss:$8 sps:$4 sm:$0xff]   ;;  %s193_s19 = scalar_lea.vmem [#allocation7], %s537_s17  ;;  %s619_s24 = sshll.u32 %s880_s12, 9 }
  0x42   : > { %v1047_v2 = vadd.s32 48, %v1044_v1  ;;  %v1050_v3 = vadd.s32 56, %v1044_v1  ;;  %v1053_v4 = vadd.s32 32, %v1044_v1  ;;  %v1056_v5 = vadd.s32 40, %v1044_v1  ;;  %s431_s21 = sshll.u32 %s193_s19, 4  ;;  %s1146_s18 = scalar_lea.hbm %s1196_s2, %s619_s24  ;;  %s1141_s21 = int_to_ptr.vmem [resolvable:$true] %s431_s21 }
  0x43   : > { %v1059_v6 = vadd.s32 16, %v1044_v1  ;;  %v1062_v7 = vadd.s32 24, %v1044_v1  ;;  %v1079_v12 = vadd.s32 8, %v1044_v1  ;;  %s417_s12 = scalar_lea.sflag [#allocation4], %s1030_s7  ;;  %s804_s28 = scalar_lea.vmem %s1141_s21, 512 }
  0x44   : > { %vm321_vm0 = vcmp.eq.s32.totalorder %v1047_v2, %v568_v8  ;;  %vm322_vm1 = vcmp.eq.s32.totalorder %v1050_v3, %v568_v8  ;;  %vm253_vm2 = vcmp.eq.s32.totalorder %v1047_v2, %v548_v9  ;;  %vm254_vm3 = vcmp.eq.s32.totalorder %v1050_v3, %v548_v9  ;;  %p805_p1 = scmp.ne.s32.totalorder %s1141_s21, %s804_s28  ;;  %s897_s29 = smov [#allocation7]  }
  0x45   : > { %vm597_vm4 = vmpackc.low %vm322_vm1, %vm321_vm0  ;;  %vm319_vm5 = vcmp.eq.s32.totalorder %v1053_v4, %v568_v8  ;;  %vm320_vm6 = vcmp.eq.s32.totalorder %v1056_v5, %v568_v8  ;;  %vm251_vm7 = vcmp.eq.s32.totalorder %v1053_v4, %v548_v9  ;;  %vm252_vm8 = vcmp.eq.s32.totalorder %v1056_v5, %v548_v9  ;;  %s808_s30 = sshll.u32 %s897_s29, 4  ;;  %s809_s30 = int_to_ptr.vmem [resolvable:$false] %s808_s30 }
  0x46   : > { %620 = vmatprep.subr.msk.bf16.mxu0 %vm597_vm4, %v896_v11  ;;  %648 = vmatprep.subr.msk.bf16.mxu1 %vm597_vm4, %v896_v11  ;;  %vm581_vm9 = vmpackc.low %vm254_vm3, %vm253_vm2  ;;  %vm317_vm10 = vcmp.eq.s32.totalorder %v1059_v6, %v568_v8  ;;  %vm318_vm11 = vcmp.eq.s32.totalorder %v1062_v7, %v568_v8  ;;  %vm249_vm15 = vcmp.eq.s32.totalorder %v1059_v6, %v548_v9  ;;  %p806_p8 = pnand %p805_p1, %p1002_p13  ;;  %s810_s3 = scalar_lea.vmem %s809_s30, 1024 }
  0x47   : > { %621 = vmatpush3.bf16.msk.msra.mxu0 %vm581_vm9, %v896_v11  ;;  %656 = vmatpush3.bf16.msk.msra.mxu1 %vm581_vm9, %v896_v11  ;;  %vm599_vm12 = vmpackc.low %vm320_vm6, %vm319_vm5  ;;  %vm250_vm0 = vcmp.eq.s32.totalorder %v1062_v7, %v548_v9  ;;  %vm315_vm1 = vcmp.eq.s32.totalorder %v1044_v1, %v568_v8  ;;  %vm316_vm2 = vcmp.eq.s32.totalorder %v1079_v12, %v568_v8  ;;  %p811_p0 = scmp.lt.s32.totalorder %s1141_s21, %s809_s30  ;;  %p812_p2 = scmp.lt.s32.totalorder %s810_s3, %s804_s28 }
  0x48   : > { %622 = vmatprep.subr.msk.bf16.mxu0 %vm599_vm12, %v896_v11  ;;  %649 = vmatprep.subr.msk.bf16.mxu1 %vm599_vm12, %v896_v11  ;;  %vm583_vm13 = vmpackc.low %vm252_vm8, %vm251_vm7  ;;  %vm247_vm5 = vcmp.eq.s32.totalorder %v1044_v1, %v548_v9  ;;  %vm248_vm6 = vcmp.eq.s32.totalorder %v1079_v12, %v548_v9  ;;  %vm287_vm7 = vcmp.eq.s32.totalorder %v1047_v2, %v558_v14  ;;  %p807_p10 = pneg %p806_p8 }
  0x49   : > { %vm601_vm14 = vmpackc.low %vm318_vm11, %vm317_vm10  ;;  %vm288_vm8 = vcmp.eq.s32.totalorder %v1050_v3, %v558_v14  ;;  %vm219_vm11 = vcmp.eq.s32.totalorder %v1047_v2, %v538_v15  ;;  %vm220_vm12 = vcmp.eq.s32.totalorder %v1050_v3, %v538_v15  ;;  %p813_p3 = por %p812_p2, %p811_p0 }
  0x4a   : > { %vm585_vm3 = vmpackc.low %vm250_vm0, %vm249_vm15 }
  0x4b   : > { %623 = vmatpush3.bf16.msk.msra.mxu0 %vm583_vm13, %v896_v11  ;;  %657 = vmatpush3.bf16.msk.msra.mxu1 %vm583_vm13, %v896_v11  ;;  %vm603_vm4 = vmpackc.low %vm316_vm2, %vm315_vm1  ;;  %vm285_vm13 = vcmp.eq.s32.totalorder %v1053_v4, %v558_v14  ;;  %vm217_vm1 = vcmp.eq.s32.totalorder %v1053_v4, %v538_v15  ;;  %vm218_vm2 = vcmp.eq.s32.totalorder %v1056_v5, %v538_v15  ;;  %p814_p5 = pnand %p813_p3, %p807_p10 }
  0x4c   : > { %624 = vmatprep.subr.msk.bf16.mxu0 %vm601_vm14, %v896_v11  ;;  %650 = vmatprep.subr.msk.bf16.mxu1 %vm601_vm14, %v896_v11  ;;  %vm587_vm9 = vmpackc.low %vm248_vm6, %vm247_vm5  ;;  %vm286_vm14 = vcmp.eq.s32.totalorder %v1056_v5, %v558_v14 }
  0x4d   : > { %vm605_vm10 = vmpackc.low %vm288_vm8, %vm287_vm7  ;;  %vm215_vm7 = vcmp.eq.s32.totalorder %v1059_v6, %v538_v15  ;;  %vm216_vm8 = vcmp.eq.s32.totalorder %v1062_v7, %v538_v15 }
  0x4e   : > { %vm589_vm15 = vmpackc.low %vm220_vm12, %vm219_vm11 }
  0x4f   : > { %625 = vmatpush3.bf16.msk.msra.mxu0 %vm585_vm3, %v896_v11  ;;  %658 = vmatpush3.bf16.msk.msra.mxu1 %vm585_vm3, %v896_v11  ;;  %vm607_vm0 = vmpackc.low %vm286_vm14, %vm285_vm13  ;;  %vm283_vm3 = vcmp.eq.s32.totalorder %v1059_v6, %v558_v14  ;;  %vm213_vm13 = vcmp.eq.s32.totalorder %v1044_v1, %v538_v15  ;;  %vm214_vm14 = vcmp.eq.s32.totalorder %v1079_v12, %v538_v15 }
  0x50   : > { %626 = vmatprep.subr.msk.bf16.mxu0 %vm603_vm4, %v896_v11  ;;  %651 = vmatprep.subr.msk.bf16.mxu1 %vm603_vm4, %v896_v11  ;;  %vm284_vm4 = vcmp.eq.s32.totalorder %v1062_v7, %v558_v14  ;;  %vm591_vm5 = vmpackc.low %vm218_vm2, %vm217_vm1 }
  0x51   : > { %vm609_vm6 = vmpackc.low %vm284_vm4, %vm283_vm3 }
  0x52   : > { %vm593_vm11 = vmpackc.low %vm216_vm8, %vm215_vm7 }
  0x53   : > { %627 = vmatpush3.bf16.msk.msra.mxu0 %vm587_vm9, %v896_v11  ;;  %659 = vmatpush3.bf16.msk.msra.mxu1 %vm587_vm9, %v896_v11  ;;  %vm281_vm9 = vcmp.eq.s32.totalorder %v1044_v1, %v558_v14 }
  0x54   : > { %628 = vmatprep.subr.msk.bf16.mxu0 %vm605_vm10, %v896_v11  ;;  %652 = vmatprep.subr.msk.bf16.mxu1 %vm605_vm10, %v896_v11  ;;  %vm282_vm10 = vcmp.eq.s32.totalorder %v1079_v12, %v558_v14 }
  0x55   : > { %vm611_vm12 = vmpackc.low %vm282_vm10, %vm281_vm9 }
  0x57   : > { %629 = vmatpush3.bf16.msk.msra.mxu0 %vm589_vm15, %v896_v11  ;;  %660 = vmatpush3.bf16.msk.msra.mxu1 %vm589_vm15, %v896_v11  ;;  %vm595_vm15 = vmpackc.low %vm214_vm14, %vm213_vm13 }
  0x58   : > { %630 = vmatprep.subr.msk.bf16.mxu0 %vm607_vm0, %v896_v11  ;;  %653 = vmatprep.subr.msk.bf16.mxu1 %vm607_vm0, %v896_v11 }
  0x5b   : > { %631 = vmatpush3.bf16.msk.msra.mxu0 %vm591_vm5, %v896_v11  ;;  %661 = vmatpush3.bf16.msk.msra.mxu1 %vm591_vm5, %v896_v11 }
  0x5c   : > { %632 = vmatprep.subr.msk.bf16.mxu0 %vm609_vm6, %v896_v11  ;;  %654 = vmatprep.subr.msk.bf16.mxu1 %vm609_vm6, %v896_v11 }
  0x5f   : > { %633 = vmatpush3.bf16.msk.msra.mxu0 %vm593_vm11, %v896_v11  ;;  %662 = vmatpush3.bf16.msk.msra.mxu1 %vm593_vm11, %v896_v11 }
  0x60   : > { %634 = vmatprep.subr.msk.bf16.mxu0 %vm611_vm12, %v896_v11  ;;  %655 = vmatprep.subr.msk.bf16.mxu1 %vm611_vm12, %v896_v11 }
  0x63   : > { %635 = vmatpush3.bf16.msk.msra.mxu0 %vm595_vm15, %v896_v11  ;;  %663 = vmatpush3.bf16.msk.msra.mxu1 %vm595_vm15, %v896_v11 }
  0x66   : > { %396 = vmatmul.mubr.bf16.vlgmr.msra.gmra.mxu0 %v744_v16  ;;  %404 = vmatmul.mubr.bf16.vlgmr.msra.gmra.mxu1 %v747_v17 }
 0x126   : > { %v636_v18 = vpop.f32.mrf.mxu0  ;;  %v642_v19 = vpop.f32.mrf.mxu1 }
 0x128   : > { %v637_v20 = vpop.f32.mrf.mxu0  ;;  %v643_v21 = vpop.f32.mrf.mxu1 }
 0x129   : > { %v638_v22 = vadd.f32 %v637_v20, %v636_v18  ;;  %v644_v23 = vadd.f32 %v643_v21, %v642_v19 }
 0x12a   : > { %v639_v24 = vpop.f32.mrf.mxu0  ;;  %v645_v25 = vpop.f32.mrf.mxu1 }
 0x12b   : > { %412 = vst [vmem:[%s193_s19] sm:$0xff] %v638_v22  ;;  %414 = vst [vmem:[%s193_s19 + $0x10] sm:$0xff] %v644_v23 }
 0x12c   : > { %v640_v26 = vpop.f32.mrf.mxu0  ;;  %v646_v27 = vpop.f32.mrf.mxu1 }
 0x12d   : > { %v641_v28 = vadd.f32 %v640_v26, %v639_v24  ;;  %v647_v29 = vadd.f32 %v646_v27, %v645_v25 }
 0x12f   : > { %413 = vst [vmem:[%s193_s19 + $0x8] sm:$0xff] %v641_v28  ;;  %415 = vst [vmem:[%s193_s19 + $0x18] sm:$0xff] %v647_v29 }
 0x130   : > { %817 = shalt.err (!%p814_p5)
}
 0x131   : > { %s818_s6 = scalar_lea.hbm %s1146_s18, 512  ;;  %s822_s16 = scalar_lea.hbm %s1196_s2, 1024 }
 0x132   : > { %p819_p7 = scmp.ne.s32.totalorder %s1146_s18, %s818_s6  ;;  %p823_p9 = scmp.lt.s32.totalorder %s1146_s18, %s1196_s2 }
 0x133   : > { %p824_p11 = scmp.lt.s32.totalorder %s822_s16, %s818_s6 }
 0x134   : > { %p820_p6 = pnand %p819_p7, %p1002_p13 }
 0x135   : > { %p825_p12 = por %p824_p11, %p823_p9 }
 0x136   : > { %p821_p4 = pneg %p820_p6 }
 0x138   : > { %p826_p1 = pnand %p825_p12, %p821_p4 }
 0x13a   : > { %829 = shalt.err (!%p826_p1)
}
 0x13b   : > { %s898_s17 = smov 128   ;;  %s899_s19 = smov 8  }
 0x13c   : > { %670 = dma.vmem_to_hbm [thread:$0]  (%p1002_p13), %s1141_s21, 512, %s1146_s18, %s417_s12, %s898_s17, %s898_s17, %s899_s19  }
 0x13d PF: > { %s446_s24 = sand.u32 1, %s868_s9   ;;  %p1208_p8 = scmp.ne.s32.totalorder %s1201_s20, 0 }
 0x13e   : > { %p1209_p10 = scmp.ge.s32.totalorder %s888_s14, 2  ;;  %s447_s26 = scalar_lea.sflag [#allocation4], %s446_s24 }
 0x140   : > { %p681_p0 = pnand %p1209_p10, %p1208_p8 }
 0x142   : > { %p682_p2 = pneg %p681_p0 }
 0x144   : > { %863 = dma.done.wait (%p682_p2), %s447_s26, 512  }
 0x145   : > { %865 = vsyncadd (%p682_p2), %s447_s26, 4294966784  ;;  %s19_s14 = sadd.s32 1, %s888_s14   ;;  %s1210_s9 = smov %s872_s10 }
 0x146   : > { %p16_p3 = scmp.ge.s32.totalorder %s19_s14, 4   ;;  %s1211_s10 = smov %s876_s11 }
 0x147   : > { %s1212_s11 = smov %s1011_s15  ;;  %s1213_s12 = smov %s884_s13 }
 0x148   : > { %s1214_s13 = smov %s1216_s25  ;;  %18 = sbr.rel (!%p16_p3) target bundleno = 7 (0x7), region = 80 }
 0x14d   :  { %452 = vsyncpa [#allocation3], 1 }
 0x14e   :  { %454 = vsyncpa [#allocation3 + $0x1], 1 }
 0x14f   :  { %455 = vsyncpa [#allocation6], 1 }
 0x150   :  { %456 = vsyncpa [#allocation4], 1 }
 0x151   :  { %458 = vsyncpa [#allocation4 + $0x1], 1 }

</bundles_post_ra>
